<compile_context>
chip_gen: v7x
topology: tpu7x:2x2x1
jax: 0.10.0
libtpu: 0.0.40
codegen_flags: <defaults>
</compile_context>

<pallas_src>
import math

import jax
import jax.numpy as jnp
from jax.experimental import pallas as pl
from jax.experimental.pallas import tpu as pltpu


def _round_up(x, m):
    return ((x + m - 1) // m) * m


# -----------------------------------------------------------------------------
# Kernels
# -----------------------------------------------------------------------------
def fc_relu_kernel_direct(x_ref, w_ref, b_ref, o_ref):
    """f32-output path: accumulate straight into the (K-resident) output block."""
    k = pl.program_id(2)

    @pl.when(k == 0)
    def _():
        o_ref[...] = jnp.zeros_like(o_ref)

    o_ref[...] += jnp.dot(
        x_ref[...], w_ref[...], preferred_element_type=jnp.float32
    )

    @pl.when(k == pl.num_programs(2) - 1)
    def _():
        o_ref[...] = jnp.maximum(o_ref[...] + b_ref[...], 0.0)


def fc_relu_kernel_acc(x_ref, w_ref, b_ref, o_ref, acc_ref):
    """Non-f32-output path: f32 VMEM accumulator, cast only in the epilogue."""
    k = pl.program_id(2)

    @pl.when(k == 0)
    def _():
        acc_ref[...] = jnp.zeros_like(acc_ref)

    acc_ref[...] += jnp.dot(
        x_ref[...], w_ref[...], preferred_element_type=jnp.float32
    )

    @pl.when(k == pl.num_programs(2) - 1)
    def _():
        h = acc_ref[...] + b_ref[...]
        o_ref[...] = jnp.maximum(h, 0.0).astype(o_ref.dtype)


# -----------------------------------------------------------------------------
# Parameter preparation (done ONCE per layer, not per forward call)
# -----------------------------------------------------------------------------
def prepare_fc_params(weight, bias=None, *, bn=512, bk=512, use_bf16=False):
    """Pre-transpose / pre-pad the FCLayer parameters for the Pallas kernel.

    weight: [out_dim, in_dim]   (PyTorch nn.Linear convention)
    bias:   [out_dim] or None
    """
    out_dim, in_dim = weight.shape

    # Padding-aware N / K tile choice: if the 128-rounded dim fits under the
    # cap, use it directly (avoids e.g. 320 -> pad-to-512 with a 256 tile).
    n128 = _round_up(out_dim, 128)
    k128 = _round_up(in_dim, 128)
    bn = n128 if n128 <= bn else bn          # caps default to 512 (256-multiple)
    bk = k128 if k128 <= bk else bk
    Np = _round_up(out_dim, bn)
    Kp = _round_up(in_dim, bk)

    compute_dtype = jnp.bfloat16 if use_bf16 else weight.dtype

    # One-time transpose (+ cast + pad) outside the kernel; no per-call W pass.
    w_t = weight.T.astype(compute_dtype)     # [in_dim, out_dim]
    if Kp != in_dim or Np != out_dim:
        w_t = jnp.pad(w_t, ((0, Kp - in_dim), (0, Np - out_dim)))

    if bias is None:
        bias = jnp.zeros((out_dim,), dtype=jnp.float32)
    b2d = bias.reshape(1, out_dim).astype(jnp.float32)   # epilogue stays f32
    if Np != out_dim:
        b2d = jnp.pad(b2d, ((0, 0), (0, Np - out_dim)))

    return dict(
        w_t=w_t, bias=b2d,
        in_dim=in_dim, out_dim=out_dim,
        Kp=Kp, Np=Np, bn=bn, bk=bk,
        compute_dtype=jnp.dtype(compute_dtype),
    )


# -----------------------------------------------------------------------------
# Forward
# -----------------------------------------------------------------------------
def fc_layer_apply(x, params, *, bm=512):
    """FCLayer.forward (Linear -> ReLU) with pre-prepared params.

    x: [..., in_dim]  ->  [..., out_dim]
    """
    orig_shape = x.shape
    in_dim = params["in_dim"]
    out_dim = params["out_dim"]
    assert orig_shape[-1] == in_dim
    x2d = x.reshape(-1, in_dim)
    B = x2d.shape[0]

    compute_dtype = params["compute_dtype"]
    out_dtype = x.dtype                      # output keeps the activation dtype
    Kp, Np = params["Kp"], params["Np"]
    bn, bk = params["bn"], params["bk"]

    # Batch tile: dtype-aware sublane alignment (8 for f32, 16 for bf16).
    sub = 8 if compute_dtype.itemsize == 4 else 16
    bm = min(bm, _round_up(B, sub))
    bm = _round_up(bm, sub)
    Bp = _round_up(B, bm)

    # Give megacore / v7x dual-TC >= 2 parallel (i, j) tiles when possible.
    while (Bp // bm) * (Np // bn) < 2 and bm >= 256:
        bm = _round_up(bm // 2, sub)
        Bp = _round_up(B, bm)

    # Per-call work on activations only: (optional) cast + zero-pad.
    xc = x2d.astype(compute_dtype)
    if Bp != B or Kp != in_dim:
        xc = jnp.pad(xc, ((0, Bp - B), (0, Kp - in_dim)))
    # Zero padding is exact: padded K contributes 0; padded M/N sliced off below.

    w_t = params["w_t"]
    b2d = params["bias"]

    grid = (Bp // bm, Np // bn, Kp // bk)
    grid_m, grid_n, grid_k = grid

    direct = jnp.dtype(out_dtype) == jnp.float32
    kernel = fc_relu_kernel_direct if direct else fc_relu_kernel_acc
    scratch = [] if direct else [pltpu.VMEM((bm, bn), jnp.float32)]

    c_isize = compute_dtype.itemsize
    o_isize = jnp.dtype(out_dtype).itemsize
    vmem_needed = (
        2 * bm * bk * c_isize            # x tiles (double-buffered)
        + 2 * bk * bn * c_isize          # W^T tiles
        + 2 * bm * bn * o_isize          # output tiles
        + 2 * 8 * bn * 4                 # bias tiles (sublane-padded)
        + (0 if direct else bm * bn * 4) # f32 accumulator scratch
    )
    # Cap at 48 MiB: headroom on v7x (64 MiB/TC); floor of 16 MiB everywhere.
    vmem_limit = int(min(48 * 2**20, max(vmem_needed + (4 << 20), 16 * 2**20)))

    cost = pl.CostEstimate(
        flops=2 * B * in_dim * out_dim,
        transcendentals=0,
        bytes_accessed=int(
            Bp * Kp * c_isize * grid_n     # X streamed once per N-tile column
            + Kp * Np * c_isize * grid_m   # W^T streamed once per M-tile row
            + Np * 4 * grid_m              # bias
            + Bp * Np * o_isize            # output written once
        ),
    )

    # TODO(synk): if profiling shows exposed DMA on the W^T stream for very
    # large K, add pipeline_mode=pl.Buffered(3) on the W^T BlockSpec.
    out_padded = pl.pallas_call(
        kernel,
        out_shape=jax.ShapeDtypeStruct((Bp, Np), out_dtype),
        grid_spec=pltpu.PrefetchScalarGridSpec(
            num_scalar_prefetch=0,
            grid=grid,
            in_specs=[
                pl.BlockSpec((bm, bk), lambda i, j, k: (i, k)),   # activations
                pl.BlockSpec((bk, bn), lambda i, j, k: (k, j)),   # W^T
                pl.BlockSpec((1, bn), lambda i, j, k: (0, j)),    # bias
            ],
            out_specs=pl.BlockSpec((bm, bn), lambda i, j, k: (i, j)),
            scratch_shapes=scratch,
        ),
        compiler_params=pltpu.CompilerParams(
            dimension_semantics=("parallel", "parallel", "arbitrary"),
            vmem_limit_bytes=vmem_limit,
        ),
        cost_estimate=cost,
    )(xc, w_t, b2d)

    out = out_padded[:B, :out_dim]
    return out.reshape(orig_shape[:-1] + (out_dim,))


def fc_layer_forward(x, weight, bias, *, bm=512, bn=512, bk=512, use_bf16=False):
    """One-shot convenience wrapper (prep + apply).

    For repeated calls, call prepare_fc_params() once and reuse fc_layer_apply()
    so the weight transpose / pad is hoisted out of the step.
    """
    params = prepare_fc_params(weight, bias, bn=bn, bk=bk, use_bf16=use_bf16)
    return fc_layer_apply(x, params, bm=bm)


def init_fc_params(key, in_dim, out_dim, dtype=jnp.float32):
    """Matches FCLayer.reset_parameters(): xavier_uniform_(gain=1/in_dim), bias=0."""
    gain = 1.0 / in_dim
    bound = gain * math.sqrt(6.0 / (in_dim + out_dim))
    weight = jax.random.uniform(
        key, (out_dim, in_dim), dtype=dtype, minval=-bound, maxval=bound
    )
    bias = jnp.zeros((out_dim,), dtype=dtype)
    return weight, bias


def _reference(x, weight, bias):
    h = jax.lax.dot_general(
        x.astype(jnp.float32), weight.astype(jnp.float32),
        (((1,), (1,)), ((), ())), precision=jax.lax.Precision.HIGHEST,
    )
    return jnp.maximum(h + bias.astype(jnp.float32), 0.0)


if __name__ == "__main__":
    key = jax.random.PRNGKey(0)

    # --- 1) small shapes consistent with the module's forward (2-D [batch, in_dim])
    batch, in_dim, out_dim = 8, 32, 32
    kx, kw, key = jax.random.split(key, 3)
    x = jax.random.normal(kx, (batch, in_dim), dtype=jnp.float32)
    weight, bias = init_fc_params(kw, in_dim, out_dim)

    out = jax.block_until_ready(fc_layer_forward(x, weight, bias))
    ref = _reference(x, weight, bias)
    assert out.shape == (batch, out_dim)
    assert jnp.allclose(out, ref, atol=1e-4, rtol=1e-4)

    # --- 2) explicit small tiles -> exercises the tiled M/N/K grid + padding +
    #        multi-step K accumulation (direct-into-output path, f32)
    batch, in_dim, out_dim = 384, 384, 320
    kx, kw, key = jax.random.split(key, 3)
    x = jax.random.normal(kx, (batch, in_dim), dtype=jnp.float32)
    weight, bias = init_fc_params(kw, in_dim, out_dim)
    bias = bias + 0.05  # non-zero bias so the epilogue path is actually checked

    out = jax.block_until_ready(
        fc_layer_forward(x, weight, bias, bm=128, bn=128, bk=128)
    )
    ref = _reference(x, weight, bias)
    assert out.shape == (batch, out_dim)
    assert jnp.allclose(out, ref, atol=1e-4, rtol=1e-4)

    # --- 3) default (big) tiles, padding-aware bn/bk (320 -> bn=384), hoisted
    #        weight prep reused across calls, optional bf16 MXU operands
    params = prepare_fc_params(weight, bias, use_bf16=True)
    out = jax.block_until_ready(fc_layer_apply(x, params))
    out2 = jax.block_until_ready(fc_layer_apply(x * 0.5, params))  # reuse prep
    ref2 = _reference(x * 0.5, weight, bias)
    assert out.shape == (batch, out_dim)
    assert jnp.allclose(out, ref, atol=5e-3, rtol=5e-2)
    assert jnp.allclose(out2, ref2, atol=5e-3, rtol=5e-2)

    # --- 4) bf16 activations / weights -> exercises the f32-scratch epilogue path
    batch, in_dim, out_dim = 64, 256, 256
    kx, kw, key = jax.random.split(key, 3)
    xb = jax.random.normal(kx, (batch, in_dim), dtype=jnp.float32).astype(jnp.bfloat16)
    wf, bf = init_fc_params(kw, in_dim, out_dim)
    wb = wf.astype(jnp.bfloat16)
    bb = (bf + 0.01).astype(jnp.bfloat16)

    out = jax.block_until_ready(fc_layer_forward(xb, wb, bb))
    ref = _reference(xb, wb, bb)
    assert out.shape == (batch, out_dim)
    assert out.dtype == jnp.bfloat16
    assert jnp.allclose(out.astype(jnp.float32), ref, atol=1e-3, rtol=1e-2)

    # TODO(synk): dropout (train-mode RNG masking) and BatchNorm1d (running-stat
    # updates) are disabled in the module's default config and are not emitted.
    print("KERNEL_OK")
</pallas_src>

<mosaic_0001>
module attributes {stable_mosaic.version = 11 : i64} {
  func.func @fc_relu_kernel_direct(%arg0: i32, %arg1: i32, %arg2: i32, %arg3: memref<8x128xf32, #tpu.memory_space<vmem>>, %arg4: memref<128x128xf32, #tpu.memory_space<vmem>>, %arg5: memref<1x128xf32, #tpu.memory_space<vmem>>, %arg6: memref<8x128xf32, #tpu.memory_space<vmem>>) attributes {dimension_semantics = [#tpu.dimension_semantics<parallel>, #tpu.dimension_semantics<parallel>, #tpu.dimension_semantics<arbitrary>], iteration_bounds = array<i64: 1, 1, 1>, scalar_prefetch = 0 : i64, scratch_operands = 0 : i64, tpu.core_type = #tpu.core_type<tc>, window_params = [{transform_indices = @transform_0, window_bounds = array<i64: 8, 128>}, {transform_indices = @transform_1, window_bounds = array<i64: 128, 128>}, {transform_indices = @transform_2, window_bounds = array<i64: 1, 128>}, {transform_indices = @transform_3, window_bounds = array<i64: 8, 128>}]} {
    %c0_i32 = arith.constant 0 : i32
    %0 = arith.cmpi eq, %arg2, %c0_i32 : i32
    %1 = arith.extui %0 : i1 to i32
    %c0_i32_0 = arith.constant 0 : i32
    %2 = arith.cmpi ne, %1, %c0_i32_0 : i32
    scf.if %2 {
      %cst_10 = arith.constant 0.000000e+00 : f32
      %12 = vector.broadcast %cst_10 : f32 to vector<8x128xf32>
      %c0_11 = arith.constant 0 : index
      %c0_12 = arith.constant 0 : index
      %13 = vector.load %arg6[%c0_11, %c0_12] : memref<8x128xf32, #tpu.memory_space<vmem>>, vector<8x128xf32>
      tpu.vector_store %arg6[%c0_11, %c0_12], %12 {strides = array<i32>} : memref<8x128xf32, #tpu.memory_space<vmem>>, vector<8x128xf32>,
    } else {
    }
    %c0 = arith.constant 0 : index
    %c0_1 = arith.constant 0 : index
    %3 = vector.load %arg6[%c0, %c0_1] : memref<8x128xf32, #tpu.memory_space<vmem>>, vector<8x128xf32>
    %c0_2 = arith.constant 0 : index
    %c0_3 = arith.constant 0 : index
    %4 = vector.load %arg3[%c0_2, %c0_3] : memref<8x128xf32, #tpu.memory_space<vmem>>, vector<8x128xf32>
    %c0_4 = arith.constant 0 : index
    %c0_5 = arith.constant 0 : index
    %5 = vector.load %arg4[%c0_4, %c0_5] : memref<128x128xf32, #tpu.memory_space<vmem>>, vector<128x128xf32>
    %cst = arith.constant dense<0.000000e+00> : vector<8x128xf32>
    %6 = tpu.matmul %4, %5, %cst {dimension_numbers = #tpu.dot_dimension_numbers<[1], [0], [0], [1], [0, 0, 1, 1], [], []>} : vector<8x128xf32>, vector<128x128xf32>, vector<8x128xf32> -> vector<8x128xf32>
    %7 = arith.addf %3, %6 : vector<8x128xf32>
    %c0_6 = arith.constant 0 : index
    %c0_7 = arith.constant 0 : index
    %8 = vector.load %arg6[%c0_6, %c0_7] : memref<8x128xf32, #tpu.memory_space<vmem>>, vector<8x128xf32>
    tpu.vector_store %arg6[%c0_6, %c0_7], %7 {strides = array<i32>} : memref<8x128xf32, #tpu.memory_space<vmem>>, vector<8x128xf32>,
    %c0_i32_8 = arith.constant 0 : i32
    %9 = arith.cmpi eq, %arg2, %c0_i32_8 : i32
    %10 = arith.extui %9 : i1 to i32
    %c0_i32_9 = arith.constant 0 : i32
    %11 = arith.cmpi ne, %10, %c0_i32_9 : i32
    scf.if %11 {
      %c0_10 = arith.constant 0 : index
      %c0_11 = arith.constant 0 : index
      %12 = vector.load %arg6[%c0_10, %c0_11] : memref<8x128xf32, #tpu.memory_space<vmem>>, vector<8x128xf32>
      %c0_12 = arith.constant 0 : index
      %c0_13 = arith.constant 0 : index
      %13 = vector.load %arg5[%c0_12, %c0_13] : memref<1x128xf32, #tpu.memory_space<vmem>>, vector<1x128xf32>
      %14 = vector.broadcast %13 : vector<1x128xf32> to vector<8x128xf32>
      %15 = arith.addf %12, %14 : vector<8x128xf32>
      %cst_14 = arith.constant 0.000000e+00 : f32
      %16 = vector.broadcast %cst_14 : f32 to vector<8x128xf32>
      %17 = arith.maximumf %15, %16 : vector<8x128xf32>
      %c0_15 = arith.constant 0 : index
      %c0_16 = arith.constant 0 : index
      %18 = vector.load %arg6[%c0_15, %c0_16] : memref<8x128xf32, #tpu.memory_space<vmem>>, vector<8x128xf32>
      tpu.vector_store %arg6[%c0_15, %c0_16], %17 {strides = array<i32>} : memref<8x128xf32, #tpu.memory_space<vmem>>, vector<8x128xf32>,
    } else {
    }
    return
  }
  func.func @transform_0(%arg0: i32, %arg1: i32, %arg2: i32) -> (i32, i32) {
    %c0_i32 = arith.constant 0 : i32
    return %arg0, %arg2 : i32, i32
  }
  func.func @transform_1(%arg0: i32, %arg1: i32, %arg2: i32) -> (i32, i32) {
    %c0_i32 = arith.constant 0 : i32
    return %arg2, %arg1 : i32, i32
  }
  func.func @transform_2(%arg0: i32, %arg1: i32, %arg2: i32) -> (i32, i32) {
    %c0_i32 = arith.constant 0 : i32
    %c0_i32_0 = arith.constant 0 : i32
    return %c0_i32, %arg1 : i32, i32
  }
  func.func @transform_3(%arg0: i32, %arg1: i32, %arg2: i32) -> (i32, i32) {
    %c0_i32 = arith.constant 0 : i32
    return %arg0, %arg1 : i32, i32
  }
}

</mosaic_0001>

<bundles_post_ra>
// kernel: tpu_custom_call.1
= control target key start
LH: loop header
LB: loop body
LE: loop exit
PB: predicated region body
PF: predicated region fallthrough
CT: control target
= control target key end

     0   :  { %8 = vsyncpa [#allocation3], 0  ;;  %s397_s0 = inlined_call_operand.hbm [shape: f32[8,128], index: 0, kind: input, shape index: {}]   ;;  %s398_s1 = inlined_call_operand.hbm [shape: f32[128,128], index: 1, kind: input, shape index: {}]   ;;  %s399_s2 = inlined_call_operand.vmem [shape: f32[1,128], index: 2, kind: input, shape index: {}]   ;;  %s400_s3 = inlined_call_operand.hbm [shape: f32[8,128], index: 3, kind: output, shape index: {}]  }
   0x1   :  { %9 = vsyncpa [#allocation6], 0 }
   0x2   :  { %10 = vsyncpa [#allocation4], 0  ;;  %s323_s12 = smov [#allocation2]   ;;  %s324_s14 = smov [#allocation5]  }
   0x3   :  { %s17_s13 = sshll.u32 %s323_s12, 4  ;;  %s26_s15 = sshll.u32 %s324_s14, 4  ;;  %s18_s13 = int_to_ptr.vmem [resolvable:$true] %s17_s13  ;;  %s351_s15 = int_to_ptr.vmem [resolvable:$true] %s26_s15 }
   0x4   :  { %s251_s18 = scalar_lea.hbm %s397_s0, 128 }
   0x5   :  { %p252_p0 = scmp.ne.s32.totalorder %s397_s0, %s251_s18  ;;  %p255_p1 = scmp.lt.u32.totalorder %s251_s18, %s397_s0 }
   0x7   :  { %p257_p2 = pnand %p255_p1, %p252_p0 }
   0x9   :  { %260 = shalt.err (!%p257_p2)
}
   0xa   :  { %s261_s23 = scalar_lea.vmem %s18_s13, 128  ;;  %p266_p4 = scmp.lt.s32.totalorder %s18_s13, %s18_s13 }
   0xb   :  { %p262_p3 = scmp.ne.s32.totalorder %s18_s13, %s261_s23  ;;  %p267_p5 = scmp.lt.s32.totalorder %s261_s23, %s261_s23 }
   0xd   :  { %p268_p6 = por %p267_p5, %p266_p4 }
   0xf   :  { %p269_p7 = pnand %p268_p6, %p262_p3 }
  0x11   :  { %272 = shalt.err (!%p269_p7)
}
  0x12   :  { %20 = dma.hbm_to_vmem [thread:$0]  %s397_s0, 128, %s18_s13, [#allocation3]  }
  0x13   :  { %s273_s28 = scalar_lea.hbm %s398_s1, 2048 }
  0x14   :  { %p274_p8 = scmp.ne.s32.totalorder %s398_s1, %s273_s28  ;;  %p277_p9 = scmp.lt.u32.totalorder %s273_s28, %s398_s1 }
  0x16   :  { %p279_p10 = pnand %p277_p9, %p274_p8 }
  0x18   :  { %282 = shalt.err (!%p279_p10)
}
  0x19   :  { %s283_s6 = scalar_lea.vmem %s351_s15, 2048  ;;  %p288_p12 = scmp.lt.s32.totalorder %s351_s15, %s351_s15 }
  0x1a   :  { %p284_p11 = scmp.ne.s32.totalorder %s351_s15, %s283_s6  ;;  %p289_p13 = scmp.lt.s32.totalorder %s283_s6, %s283_s6 }
  0x1c   :  { %p290_p0 = por %p289_p13, %p288_p12 }
  0x1e   :  { %p291_p1 = pnand %p290_p0, %p284_p11 }
  0x20   :  { %294 = shalt.err (!%p291_p1)
}
  0x21   :  { %s325_s0 = smov 128   ;;  %s326_s7 = smov 8  }
  0x22   :  { %32 = dma.hbm_to_vmem [thread:$0]  %s398_s1, 2048, %s351_s15, [#allocation6], %s325_s0, %s325_s0, %s326_s7  }
  0x23   :  { %317 = dma.done.wait [#allocation3], 128  }
  0x24   :  { %318 = vsyncadd [#allocation3], 4294967168 }
  0x25   :  { %319 = dma.done.wait [#allocation6], 2048  }
  0x26   :  { %320 = vsyncadd [#allocation6], 4294965248  ;;  %v327_v0 = vmov 0.0|0.0   ;;  %vm328_vm0 = vmmov 0   ;;  %v329_v1 = vmov 0.0   ;;  %v48_v2 = vld [vmem:[#allocation5] sm:$0xff] }
  0x27   :  { %219 = vmatprep.subr.bf16.mxu0 %v327_v0  ;;  %216 = vmatprep.mubr.msk.f32.mxu0 %vm328_vm0, %v329_v1  ;;  %v49_v3 = vld [vmem:[#allocation5 + $0x8] sm:$0xff]  ;;  %v50_v4 = vld [vmem:[#allocation5 + $0x10] sm:$0xff]  ;;  %v51_v6 = vld [vmem:[#allocation5 + $0x18] sm:$0xff]  ;;  %s330_s11 = smov [#allocation7]  }
  0x28   :  { %v220_v5 = vpack.c.bf16 %v49_v3, %v48_v2  ;;  %v223_v7 = vpack.c.bf16 %v51_v6, %v50_v4  ;;  %v52_v8 = vld [vmem:[#allocation5 + $0x20] sm:$0xff]  ;;  %v53_v9 = vld [vmem:[#allocation5 + $0x28] sm:$0xff]  ;;  %v54_v11 = vld [vmem:[#allocation5 + $0x30] sm:$0xff]  ;;  %s156_s12 = sshll.u32 %s330_s11, 4  ;;  %s157_s12 = int_to_ptr.vmem [resolvable:$true] %s156_s12 }
  0x29   :  { %v226_v10 = vpack.c.bf16 %v53_v9, %v52_v8  ;;  %v55_v12 = vld [vmem:[#allocation5 + $0x38] sm:$0xff]  ;;  %v56_v14 = vld [vmem:[#allocation5 + $0x40] sm:$0xff]  ;;  %v57_v15 = vld [vmem:[#allocation5 + $0x48] sm:$0xff]  ;;  %s295_s13 = scalar_lea.vmem %s157_s12, 128  ;;  %p300_p3 = scmp.lt.s32.totalorder %s157_s12, %s157_s12 }
  0x2a   :  { %221 = vmatpush3.bf16.msra.mxu0 %v220_v5  ;;  %v229_v13 = vpack.c.bf16 %v55_v12, %v54_v11  ;;  %v232_v16 = vpack.c.bf16 %v57_v15, %v56_v14  ;;  %v58_v17 = vld [vmem:[#allocation5 + $0x50] sm:$0xff]  ;;  %v59_v18 = vld [vmem:[#allocation5 + $0x58] sm:$0xff]  ;;  %v60_v20 = vld [vmem:[#allocation5 + $0x60] sm:$0xff]  ;;  %p296_p2 = scmp.ne.s32.totalorder %s157_s12, %s295_s13  ;;  %p301_p4 = scmp.lt.s32.totalorder %s295_s13, %s295_s13 }
  0x2b   :  { %222 = vmatprep.subr.bf16.mxu0 %v327_v0  ;;  %v235_v19 = vpack.c.bf16 %v59_v18, %v58_v17  ;;  %v61_v21 = vld [vmem:[#allocation5 + $0x68] sm:$0xff]  ;;  %v62_v23 = vld [vmem:[#allocation5 + $0x70] sm:$0xff]  ;;  %v63_v24 = vld [vmem:[#allocation5 + $0x78] sm:$0xff] }
  0x2c   :  { %v238_v22 = vpack.c.bf16 %v61_v21, %v60_v20  ;;  %v241_v25 = vpack.c.bf16 %v63_v24, %v62_v23  ;;  %v47_v26 = vld [vmem:[#allocation2] sm:$0xff]  ;;  %p302_p5 = por %p301_p4, %p300_p3 }
  0x2d   :  { %v166_v28 = vld [vmem:[%s399_s2] ss:$0 sm:$0xff] }
  0x2e   :  { %224 = vmatpush3.bf16.msra.mxu0 %v223_v7  ;;  %p303_p6 = pnand %p302_p5, %p296_p2 }
  0x2f   :  { %225 = vmatprep.subr.bf16.mxu0 %v327_v0 }
  0x32   :  { %227 = vmatpush3.bf16.msra.mxu0 %v226_v10 }
  0x33   :  { %228 = vmatprep.subr.bf16.mxu0 %v327_v0 }
  0x36   :  { %230 = vmatpush3.bf16.msra.mxu0 %v229_v13 }
  0x37   :  { %231 = vmatprep.subr.bf16.mxu0 %v327_v0 }
  0x3a   :  { %233 = vmatpush3.bf16.msra.mxu0 %v232_v16 }
  0x3b   :  { %234 = vmatprep.subr.bf16.mxu0 %v327_v0 }
  0x3e   :  { %236 = vmatpush3.bf16.msra.mxu0 %v235_v19 }
  0x3f   :  { %237 = vmatprep.subr.bf16.mxu0 %v327_v0 }
  0x42   :  { %239 = vmatpush3.bf16.msra.mxu0 %v238_v22 }
  0x43   :  { %240 = vmatprep.subr.bf16.mxu0 %v327_v0 }
  0x46   :  { %242 = vmatpush3.bf16.msra.mxu0 %v241_v25 }
  0x49   :  { %217 = vmatmul.mubr.f32.vlgmr.msra.gmra.mrb[0].mxu0 %v47_v26 }
 0x11c   :  { %v130_v27 = vpop.f32.mrb[0].mxu0 }
 0x11d   :  { %v218_v29 = vpop.f32.mrb[1].mxu0  ;;  %v147_v30 = vadd.f32 %v166_v28, %v130_v27 }
 0x11f   :  { %v148_v31 = vmax.f32 %v147_v30, 0.0 }
 0x121   :  { %149 = vst [vmem:[#allocation7] sm:$0xff] %v148_v31 }
 0x122   :  { %306 = shalt.err (!%p303_p6)
}
 0x123   :  { %s307_s16 = scalar_lea.hbm %s400_s3, 128 }
 0x124   :  { %p308_p7 = scmp.ne.s32.totalorder %s400_s3, %s307_s16  ;;  %p311_p8 = scmp.lt.u32.totalorder %s307_s16, %s400_s3 }
 0x126   :  { %p313_p9 = pnand %p311_p8, %p308_p7 }
 0x128   :  { %316 = shalt.err (!%p313_p9)
}
 0x129   :  { %159 = dma.vmem_to_hbm [thread:$0]  %s157_s12, 128, %s400_s3, [#allocation4]  }
 0x12a   :  { %321 = dma.done.wait [#allocation4], 128  }
 0x12b   :  { %322 = vsyncadd [#allocation4], 4294967168 }
 0x12c   :  { %163 = vsyncpa [#allocation3], 1 }
 0x12d   :  { %164 = vsyncpa [#allocation6], 1 }
 0x12e   :  { %165 = vsyncpa [#allocation4], 1 }

</bundles_post_ra>
